<compile_context>
chip_gen: v6e
topology: v6e:2x2x1
jax: 0.10.0
libtpu: 0.0.40
codegen_flags: <defaults>
</compile_context>

<pallas_src>
import functools
import math

import jax
import jax.numpy as jnp
from jax.experimental import pallas as pl
from jax.experimental.pallas import tpu as pltpu


def _round_up(x, m):
    return ((x + m - 1) // m) * m


def _packed_kernel(h_ref, w_ref, eps_ref, *out_refs, min_std, z_split):
    """Lane-packed path: h_ref (tile_p, pack*D), w_ref (pack*D, 2*pack*Z),
    eps/out refs (tile_p, pack*Z) with pack*Z == 128 (lane-dense)."""
    # One fused MXU dot -> [mu_packed | logvar_packed].
    y = jnp.dot(h_ref[...], w_ref[...], preferred_element_type=jnp.float32)
    mu = y[:, :z_split]            # z_split is a multiple of 128: vreg-aligned
    logvar = y[:, z_split:]
    std = jnp.maximum(jnp.exp(0.5 * logvar), min_std)
    z = mu + std * eps_ref[...].astype(jnp.float32)
    if len(out_refs) == 3:
        _, mu_ref, std_ref = out_refs
        mu_ref[...] = mu.astype(mu_ref.dtype)
        std_ref[...] = std.astype(std_ref.dtype)
    out_refs[0][...] = z.astype(out_refs[0].dtype)


def _plain_kernel(h_ref, wmu_ref, wlv_ref, eps_ref, *out_refs, min_std):
    """Fallback path (z_dim does not divide 128): plain (tile_m, z_dim) layout,
    two dots so no sub-lane slicing is needed."""
    h = h_ref[...]
    mu = jnp.dot(h, wmu_ref[...], preferred_element_type=jnp.float32)
    logvar = jnp.dot(h, wlv_ref[...], preferred_element_type=jnp.float32)
    std = jnp.maximum(jnp.exp(0.5 * logvar), min_std)
    z = mu + std * eps_ref[...].astype(jnp.float32)
    if len(out_refs) == 3:
        _, mu_ref, std_ref = out_refs
        mu_ref[...] = mu.astype(mu_ref.dtype)
        std_ref[...] = std.astype(std_ref.dtype)
    out_refs[0][...] = z.astype(out_refs[0].dtype)


def parametrized_gaussian(h, weight, eps, *, min_std=1e-4, return_params=True,
                          tile_rows=2048):
    """h: (..., input_dim); weight: (2*z_dim, input_dim) (PyTorch Linear layout,
    bias=False); eps: (..., z_dim) standard-normal noise."""
    input_dim = h.shape[-1]
    z_dim = weight.shape[0] // 2
    lead = h.shape[:-1]
    M = math.prod(lead)
    out_dtype = h.dtype

    # Lane-packing factor: put `pack` consecutive rows into the 128 lanes.
    pack = 128 // z_dim if (0 < z_dim <= 128 and 128 % z_dim == 0) else 1
    # Keep the block-diagonal packed weight (pack*D x 2*pack*Z) modest; for very
    # wide input_dim the zero-padding MAC inflation isn't worth it.
    if pack > 1 and pack * input_dim > 4096:
        pack = 1

    row_unit = 8 * pack                       # (8, 128) tiling granularity
    tile_m = max(row_unit,
                 min(_round_up(tile_rows, row_unit), _round_up(M, row_unit)))
    M_pad = _round_up(M, tile_m)
    grid = (M_pad // tile_m,)

    h2 = h.reshape(M, input_dim)
    eps2 = eps.reshape(M, z_dim)
    if M_pad != M:                            # zero-pad the trailing tile
        h2 = jnp.pad(h2, ((0, M_pad - M), (0, 0)))
        eps2 = jnp.pad(eps2, ((0, M_pad - M), (0, 0)))

    wT = jnp.transpose(weight)                # (D, 2Z) = [w_mu | w_logvar]
    w_mu, w_lv = wT[:, :z_dim], wT[:, z_dim:]

    cparams = pltpu.CompilerParams(dimension_semantics=("parallel",))
    n_out = 3 if return_params else 1

    if pack > 1:
        zp = z_dim * pack                     # == 128
        dp = input_dim * pack
        tile_p = tile_m // pack
        rows_p = M_pad // pack
        # Free row-major repacks (identical HBM layout, no data movement).
        h_packed = h2.reshape(rows_p, dp)
        eps_packed = eps2.reshape(rows_p, zp)
        # Block-diagonal weights: output lanes [j*Z:(j+1)*Z] <- packed row j.
        eye = jnp.eye(pack, dtype=wT.dtype)
        w_mu_bd = jnp.einsum("pq,dz->pdqz", eye, w_mu).reshape(dp, zp)
        w_lv_bd = jnp.einsum("pq,dz->pdqz", eye, w_lv).reshape(dp, zp)
        w_big = jnp.concatenate([w_mu_bd, w_lv_bd], axis=1)   # (dp, 2*zp)

        kernel = functools.partial(_packed_kernel, min_std=float(min_std),
                                   z_split=zp)
        h_spec = pl.BlockSpec((tile_p, dp), lambda i: (i, 0))
        w_spec = pl.BlockSpec((dp, 2 * zp), lambda i: (0, 0))   # VMEM-resident
        e_spec = pl.BlockSpec((tile_p, zp), lambda i: (i, 0))
        o_spec = pl.BlockSpec((tile_p, zp), lambda i: (i, 0))
        outs = pl.pallas_call(
            kernel,
            out_shape=tuple(jax.ShapeDtypeStruct((rows_p, zp), out_dtype)
                            for _ in range(n_out)),
            grid_spec=pltpu.PrefetchScalarGridSpec(
                num_scalar_prefetch=0, grid=grid,
                in_specs=[h_spec, w_spec, e_spec],
                out_specs=[o_spec] * n_out),
            compiler_params=cparams,
        )(h_packed, w_big, eps_packed)
    else:
        kernel = functools.partial(_plain_kernel, min_std=float(min_std))
        h_spec = pl.BlockSpec((tile_m, input_dim), lambda i: (i, 0))
        w_spec = pl.BlockSpec((input_dim, z_dim), lambda i: (0, 0))
        e_spec = pl.BlockSpec((tile_m, z_dim), lambda i: (i, 0))
        o_spec = pl.BlockSpec((tile_m, z_dim), lambda i: (i, 0))
        outs = pl.pallas_call(
            kernel,
            out_shape=tuple(jax.ShapeDtypeStruct((M_pad, z_dim), out_dtype)
                            for _ in range(n_out)),
            grid_spec=pltpu.PrefetchScalarGridSpec(
                num_scalar_prefetch=0, grid=grid,
                in_specs=[h_spec, w_spec, w_spec, e_spec],
                out_specs=[o_spec] * n_out),
            compiler_params=cparams,
        )(h2, w_mu, w_lv, eps2)

    def unshape(a):
        a = a.reshape(M_pad, z_dim)[:M]
        return a.reshape(*lead, z_dim)

    outs = tuple(unshape(a) for a in outs)
    return outs if return_params else outs[0]


def _reference(h, weight, eps, min_std):
    y = h @ weight.T
    z_dim = weight.shape[0] // 2
    mu, logvar = y[..., :z_dim], y[..., z_dim:]
    std = jnp.maximum(jnp.exp(0.5 * logvar), min_std)
    return mu + std * eps, mu, std


if __name__ == "__main__":
    # Module config (small): input_dim=32, z_dim=16, bias=False.
    input_dim, z_dim = 32, 16
    batch, seq = 2, 8                      # h: (batch, seq, input_dim)
    min_std = 1e-4

    key = jax.random.PRNGKey(0)
    k_h, k_w, k_eps, k_h2, k_e2 = jax.random.split(key, 5)

    h = jax.random.normal(k_h, (batch, seq, input_dim), dtype=jnp.float32)
    # nn.Linear default init: U(-1/sqrt(in), 1/sqrt(in)), shape (2*z_dim, D).
    bound = 1.0 / (input_dim ** 0.5)
    weight = jax.random.uniform(k_w, (2 * z_dim, input_dim),
                                minval=-bound, maxval=bound, dtype=jnp.float32)
    # TODO(synk): torch.randn is generated inside forward(); here eps is passed
    # in (host-side jax.random) so the kernel output is deterministic/testable.
    eps = jax.random.normal(k_eps, (batch, seq, z_dim), dtype=jnp.float32)

    z, mu, std = parametrized_gaussian(h, weight, eps, min_std=min_std)
    z_only = parametrized_gaussian(h, weight, eps, min_std=min_std,
                                   return_params=False)
    jax.block_until_ready((z, mu, std, z_only))

    z_r, mu_r, std_r = _reference(h, weight, eps, min_std)
    assert z.shape == (batch, seq, z_dim) and z_only.shape == z.shape
    assert jnp.allclose(mu, mu_r, atol=1e-5), "mu mismatch"
    assert jnp.allclose(std, std_r, atol=1e-5), "std mismatch"
    assert jnp.allclose(z, z_r, atol=1e-5), "z mismatch"
    assert jnp.allclose(z_only, z_r, atol=1e-5), "z-only mismatch"

    # Second shape with a ragged row count to exercise padding + tiling.
    h_b = jax.random.normal(k_h2, (3, 25, input_dim), dtype=jnp.float32)
    eps_b = jax.random.normal(k_e2, (3, 25, z_dim), dtype=jnp.float32)
    z_b, mu_b, std_b = parametrized_gaussian(h_b, weight, eps_b, min_std=min_std)
    jax.block_until_ready((z_b, mu_b, std_b))
    z_br, mu_br, std_br = _reference(h_b, weight, eps_b, min_std)
    assert jnp.allclose(mu_b, mu_br, atol=1e-5), "mu mismatch (padded case)"
    assert jnp.allclose(std_b, std_br, atol=1e-5), "std mismatch (padded case)"
    assert jnp.allclose(z_b, z_br, atol=1e-5), "z mismatch (padded case)"

    print("KERNEL_OK")
</pallas_src>

<mosaic_0001>
module attributes {stable_mosaic.version = 11 : i64} {
  func.func @_packed_kernel(%arg0: i32, %arg1: memref<8x256xf32, #tpu.memory_space<vmem>>, %arg2: memref<256x256xf32, #tpu.memory_space<vmem>>, %arg3: memref<8x128xf32, #tpu.memory_space<vmem>>, %arg4: memref<8x128xf32, #tpu.memory_space<vmem>>, %arg5: memref<8x128xf32, #tpu.memory_space<vmem>>, %arg6: memref<8x128xf32, #tpu.memory_space<vmem>>) attributes {dimension_semantics = [#tpu.dimension_semantics<parallel>], iteration_bounds = array<i64: 1>, scalar_prefetch = 0 : i64, scratch_operands = 0 : i64, tpu.core_type = #tpu.core_type<tc>, window_params = [{transform_indices = @transform_0, window_bounds = array<i64: 8, 256>}, {pipeline_mode = #tpu.pipeline_mode<synchronous>, transform_indices = @transform_1, window_bounds = array<i64: 256, 256>}, {transform_indices = @transform_2, window_bounds = array<i64: 8, 128>}, {transform_indices = @transform_3, window_bounds = array<i64: 8, 128>}, {transform_indices = @transform_4, window_bounds = array<i64: 8, 128>}, {transform_indices = @transform_5, window_bounds = array<i64: 8, 128>}]} {
    %c0 = arith.constant 0 : index
    %c0_0 = arith.constant 0 : index
    %0 = vector.load %arg1[%c0, %c0_0] : memref<8x256xf32, #tpu.memory_space<vmem>>, vector<8x256xf32>
    %c0_1 = arith.constant 0 : index
    %c0_2 = arith.constant 0 : index
    %1 = vector.load %arg2[%c0_1, %c0_2] : memref<256x256xf32, #tpu.memory_space<vmem>>, vector<256x256xf32>
    %cst = arith.constant dense<0.000000e+00> : vector<8x256xf32>
    %2 = tpu.matmul %0, %1, %cst {dimension_numbers = #tpu.dot_dimension_numbers<[1], [0], [0], [1], [0, 0, 1, 1], [], []>} : vector<8x256xf32>, vector<256x256xf32>, vector<8x256xf32> -> vector<8x256xf32>
    %3 = vector.extract_strided_slice %2 {offsets = [0, 0], sizes = [8, 128], strides = [1, 1]} : vector<8x256xf32> to vector<8x128xf32>
    %4 = vector.extract_strided_slice %2 {offsets = [0, 128], sizes = [8, 128], strides = [1, 1]} : vector<8x256xf32> to vector<8x128xf32>
    %cst_3 = arith.constant 5.000000e-01 : f32
    %5 = vector.broadcast %cst_3 : f32 to vector<8x128xf32>
    %6 = arith.mulf %5, %4 : vector<8x128xf32>
    %7 = math.exp %6 : vector<8x128xf32>
    %cst_4 = arith.constant 9.99999974E-5 : f32
    %8 = vector.broadcast %cst_4 : f32 to vector<8x128xf32>
    %9 = arith.maximumf %7, %8 : vector<8x128xf32>
    %c0_5 = arith.constant 0 : index
    %c0_6 = arith.constant 0 : index
    %10 = vector.load %arg3[%c0_5, %c0_6] : memref<8x128xf32, #tpu.memory_space<vmem>>, vector<8x128xf32>
    %11 = arith.mulf %9, %10 : vector<8x128xf32>
    %12 = arith.addf %3, %11 : vector<8x128xf32>
    %c0_7 = arith.constant 0 : index
    %c0_8 = arith.constant 0 : index
    %13 = vector.load %arg5[%c0_7, %c0_8] : memref<8x128xf32, #tpu.memory_space<vmem>>, vector<8x128xf32>
    tpu.vector_store %arg5[%c0_7, %c0_8], %3 {strides = array<i32>} : memref<8x128xf32, #tpu.memory_space<vmem>>, vector<8x128xf32>,
    %c0_9 = arith.constant 0 : index
    %c0_10 = arith.constant 0 : index
    %14 = vector.load %arg6[%c0_9, %c0_10] : memref<8x128xf32, #tpu.memory_space<vmem>>, vector<8x128xf32>
    tpu.vector_store %arg6[%c0_9, %c0_10], %9 {strides = array<i32>} : memref<8x128xf32, #tpu.memory_space<vmem>>, vector<8x128xf32>,
    %c0_11 = arith.constant 0 : index
    %c0_12 = arith.constant 0 : index
    %15 = vector.load %arg4[%c0_11, %c0_12] : memref<8x128xf32, #tpu.memory_space<vmem>>, vector<8x128xf32>
    tpu.vector_store %arg4[%c0_11, %c0_12], %12 {strides = array<i32>} : memref<8x128xf32, #tpu.memory_space<vmem>>, vector<8x128xf32>,
    return
  }
  func.func @transform_0(%arg0: i32) -> (i32, i32) {
    %c0_i32 = arith.constant 0 : i32
    %c0_i32_0 = arith.constant 0 : i32
    return %arg0, %c0_i32 : i32, i32
  }
  func.func @transform_1(%arg0: i32) -> (i32, i32) {
    %c0_i32 = arith.constant 0 : i32
    %c0_i32_0 = arith.constant 0 : i32
    %c0_i32_1 = arith.constant 0 : i32
    return %c0_i32, %c0_i32_0 : i32, i32
  }
  func.func @transform_2(%arg0: i32) -> (i32, i32) {
    %c0_i32 = arith.constant 0 : i32
    %c0_i32_0 = arith.constant 0 : i32
    return %arg0, %c0_i32 : i32, i32
  }
  func.func @transform_3(%arg0: i32) -> (i32, i32) {
    %c0_i32 = arith.constant 0 : i32
    %c0_i32_0 = arith.constant 0 : i32
    return %arg0, %c0_i32 : i32, i32
  }
  func.func @transform_4(%arg0: i32) -> (i32, i32) {
    %c0_i32 = arith.constant 0 : i32
    %c0_i32_0 = arith.constant 0 : i32
    return %arg0, %c0_i32 : i32, i32
  }
  func.func @transform_5(%arg0: i32) -> (i32, i32) {
    %c0_i32 = arith.constant 0 : i32
    %c0_i32_0 = arith.constant 0 : i32
    return %arg0, %c0_i32 : i32, i32
  }
}

</mosaic_0001>

<bundles_post_ra>
// kernel: tpu_custom_call.1
= control target key start
LH: loop header
LB: loop body
LE: loop exit
PB: predicated region body
PF: predicated region fallthrough
CT: control target
= control target key end

     0   :  { %11 = vsyncpa [#allocation3], 0  ;;  %s440_s0 = inlined_call_operand.hbm [shape: f32[8,256], index: 0, kind: input, shape index: {}]   ;;  %s441_s1 = inlined_call_operand.hbm [shape: f32[256,256], index: 1, kind: input, shape index: {}]   ;;  %s442_s2 = inlined_call_operand.hbm [shape: f32[8,128], index: 2, kind: input, shape index: {}]   ;;  %s443_s3 = inlined_call_operand.hbm [shape: f32[8,128], index: 3, kind: output, shape index: {0}]   ;;  %s444_s4 = inlined_call_operand.hbm [shape: f32[8,128], index: 4, kind: output, shape index: {1}]   ;;  %s445_s5 = inlined_call_operand.hbm [shape: f32[8,128], index: 5, kind: output, shape index: {2}]  }
   0x1   :  { %12 = vsyncpa [#allocation6], 0 }
   0x2   :  { %13 = vsyncpa [#allocation4], 0 }
   0x3   :  { %14 = vsyncpa [#allocation10], 0  ;;  %s384_s18 = smov [#allocation5]  }
   0x4   :  { %s30_s19 = sshll.u32 %s384_s18, 4  ;;  %s31_s19 = int_to_ptr.vmem [resolvable:$true] %s30_s19 }
   0x5   :  { %s264_s20 = scalar_lea.vmem %s31_s19, 8192  ;;  %p269_p1 = scmp.lt.s32.totalorder %s31_s19, %s31_s19 }
   0x6   :  { %p265_p0 = scmp.ne.s32.totalorder %s31_s19, %s264_s20  ;;  %p270_p2 = scmp.lt.s32.totalorder %s264_s20, %s264_s20 }
   0x8   :  { %p271_p3 = por %p270_p2, %p269_p1 }
   0xa   :  { %p272_p4 = pnand %p271_p3, %p265_p0 }
   0xc   :  { %275 = shalt.err (!%p272_p4)
}
   0xd   :  { %s385_s21 = smov 256   ;;  %s386_s22 = smov 16  }
   0xe   :  { %36 = dma.hbm_to_vmem [thread:$0]  %s441_s1, 8192, %s31_s19, [#allocation6], %s385_s21, %s385_s21, %s386_s22  }
   0xf   :  { %s387_s25 = smov [#allocation2]   ;;  %s388_s27 = smov [#allocation7]  }
  0x10   :  { %s21_s26 = sshll.u32 %s387_s25, 4  ;;  %s43_s28 = sshll.u32 %s388_s27, 4  ;;  %s22_s26 = int_to_ptr.vmem [resolvable:$true] %s21_s26  ;;  %s44_s28 = int_to_ptr.vmem [resolvable:$true] %s43_s28 }
  0x11   :  { %s284_s29 = scalar_lea.vmem %s22_s26, 256  ;;  %p289_p6 = scmp.lt.s32.totalorder %s22_s26, %s22_s26 }
  0x12   :  { %p285_p5 = scmp.ne.s32.totalorder %s22_s26, %s284_s29  ;;  %p290_p7 = scmp.lt.s32.totalorder %s284_s29, %s284_s29 }
  0x14   :  { %p291_p8 = por %p290_p7, %p289_p6 }
  0x16   :  { %p292_p9 = pnand %p291_p8, %p285_p5 }
  0x18   :  { %295 = shalt.err (!%p292_p9)
}
  0x19   :  { %24 = dma.hbm_to_vmem [thread:$0]  %s440_s0, 256, %s22_s26, [#allocation3]  }
  0x1a   :  { %s304_s7 = scalar_lea.vmem %s44_s28, 128  ;;  %p309_p11 = scmp.lt.s32.totalorder %s44_s28, %s44_s28 }
  0x1b   :  { %p305_p10 = scmp.ne.s32.totalorder %s44_s28, %s304_s7  ;;  %p310_p12 = scmp.lt.s32.totalorder %s304_s7, %s304_s7 }
  0x1d   :  { %p311_p13 = por %p310_p12, %p309_p11 }
  0x1f   :  { %p312_p0 = pnand %p311_p13, %p305_p10 }
  0x21   :  { %315 = shalt.err (!%p312_p0)
}
  0x22   :  { %46 = dma.hbm_to_vmem [thread:$0]  %s442_s2, 128, %s44_s28, [#allocation6]  }
  0x23   :  { %376 = dma.done.wait [#allocation3], 256  }
  0x24   :  { %377 = vsyncadd [#allocation3], 4294967040 }
  0x25   :  { %378 = dma.done.wait [#allocation6], 8320  }
  0x26   :  { %379 = vsyncadd [#allocation6], 4294958976  ;;  %v89_v0 = vld [vmem:[#allocation5 + $0xf8] sm:$0xff]  ;;  %v88_v1 = vld [vmem:[#allocation5 + $0xf0] sm:$0xff]  ;;  %s389_s0 = smov [#allocation9]  }
  0x27   :  { %v87_v2 = vld [vmem:[#allocation5 + $0xe8] sm:$0xff]  ;;  %122 = vmatprep.subr.mxu0 %v89_v0  ;;  %v86_v3 = vld [vmem:[#allocation5 + $0xe0] sm:$0xff]  ;;  %v85_v4 = vld [vmem:[#allocation5 + $0xd8] sm:$0xff]  ;;  %s219_s2 = sshll.u32 %s389_s0, 4  ;;  %s220_s2 = int_to_ptr.vmem [resolvable:$true] %s219_s2 }
  0x28   :  { %123 = vmatpush1.msra.mxu0 %v88_v1  ;;  %v84_v5 = vld [vmem:[#allocation5 + $0xd0] sm:$0xff]  ;;  %v83_v6 = vld [vmem:[#allocation5 + $0xc8] sm:$0xff]  ;;  %v82_v7 = vld [vmem:[#allocation5 + $0xc0] sm:$0xff]  ;;  %s316_s9 = scalar_lea.vmem %s220_s2, 128  ;;  %p321_p2 = scmp.lt.s32.totalorder %s220_s2, %s220_s2 }
  0x29   :  { %124 = vmatprep.subr.mxu0 %v87_v2  ;;  %v81_v8 = vld [vmem:[#allocation5 + $0xb8] sm:$0xff]  ;;  %v80_v9 = vld [vmem:[#allocation5 + $0xb0] sm:$0xff]  ;;  %v79_v10 = vld [vmem:[#allocation5 + $0xa8] sm:$0xff]  ;;  %p317_p1 = scmp.ne.s32.totalorder %s220_s2, %s316_s9  ;;  %p322_p3 = scmp.lt.s32.totalorder %s316_s9, %s316_s9 }
  0x2a   :  { %125 = vmatpush1.msra.mxu0 %v86_v3  ;;  %v78_v11 = vld [vmem:[#allocation5 + $0xa0] sm:$0xff]  ;;  %v77_v12 = vld [vmem:[#allocation5 + $0x98] sm:$0xff]  ;;  %v76_v13 = vld [vmem:[#allocation5 + $0x90] sm:$0xff] }
  0x2b   :  { %126 = vmatprep.subr.mxu0 %v85_v4  ;;  %v75_v14 = vld [vmem:[#allocation5 + $0x88] sm:$0xff]  ;;  %v74_v15 = vld [vmem:[#allocation5 + $0x80] sm:$0xff]  ;;  %v73_v16 = vld [vmem:[#allocation5 + $0x78] sm:$0xff]  ;;  %p323_p4 = por %p322_p3, %p321_p2 }
  0x2c   :  { %127 = vmatpush1.msra.mxu0 %v84_v5  ;;  %v72_v17 = vld [vmem:[#allocation5 + $0x70] sm:$0xff]  ;;  %v71_v18 = vld [vmem:[#allocation5 + $0x68] sm:$0xff]  ;;  %v70_v19 = vld [vmem:[#allocation5 + $0x60] sm:$0xff] }
  0x2d   :  { %128 = vmatprep.subr.mxu0 %v83_v6  ;;  %v69_v20 = vld [vmem:[#allocation5 + $0x58] sm:$0xff]  ;;  %v68_v21 = vld [vmem:[#allocation5 + $0x50] sm:$0xff]  ;;  %v67_v22 = vld [vmem:[#allocation5 + $0x48] sm:$0xff]  ;;  %p324_p5 = pnand %p323_p4, %p317_p1 }
  0x2e   :  { %129 = vmatpush1.msra.mxu0 %v82_v7  ;;  %v66_v23 = vld [vmem:[#allocation5 + $0x40] sm:$0xff]  ;;  %v57_v24 = vld [vmem:[#allocation2 + $0x8] sm:$0xff]  ;;  %v64_v26 = vld [vmem:[#allocation5 + $0x30] sm:$0xff] }
  0x2f   :  { %130 = vmatprep.subr.mxu0 %v81_v8  ;;  %v65_v25 = vld [vmem:[#allocation5 + $0x38] sm:$0xff]  ;;  %186 = vmatprep.mubr.f32.mxu0 %v57_v24  ;;  %v63_v27 = vld [vmem:[#allocation5 + $0x28] sm:$0xff]  ;;  %v62_v28 = vld [vmem:[#allocation5 + $0x20] sm:$0xff] }
  0x30   :  { %131 = vmatpush1.msra.mxu0 %v80_v9  ;;  %v61_v29 = vld [vmem:[#allocation5 + $0x18] sm:$0xff]  ;;  %v60_v30 = vld [vmem:[#allocation5 + $0x10] sm:$0xff]  ;;  %v59_v31 = vld [vmem:[#allocation5 + $0x8] sm:$0xff] }
  0x31   :  { %132 = vmatprep.subr.mxu0 %v79_v10  ;;  %v58_v32 = vld [vmem:[#allocation5] sm:$0xff]  ;;  %v121_v33 = vld [vmem:[#allocation5 + $0x1f8] sm:$0xff]  ;;  %v120_v34 = vld [vmem:[#allocation5 + $0x1f0] sm:$0xff] }
  0x32   :  { %133 = vmatpush1.msra.mxu0 %v78_v11  ;;  %v119_v35 = vld [vmem:[#allocation5 + $0x1e8] sm:$0xff]  ;;  %v118_v36 = vld [vmem:[#allocation5 + $0x1e0] sm:$0xff]  ;;  %v117_v37 = vld [vmem:[#allocation5 + $0x1d8] sm:$0xff] }
  0x33   :  { %134 = vmatprep.subr.mxu0 %v77_v12  ;;  %v116_v38 = vld [vmem:[#allocation5 + $0x1d0] sm:$0xff]  ;;  %v115_v39 = vld [vmem:[#allocation5 + $0x1c8] sm:$0xff]  ;;  %v114_v40 = vld [vmem:[#allocation5 + $0x1c0] sm:$0xff] }
  0x34   :  { %135 = vmatpush1.msra.mxu0 %v76_v13  ;;  %v113_v41 = vld [vmem:[#allocation5 + $0x1b8] sm:$0xff]  ;;  %v112_v42 = vld [vmem:[#allocation5 + $0x1b0] sm:$0xff]  ;;  %v111_v43 = vld [vmem:[#allocation5 + $0x1a8] sm:$0xff] }
  0x35   :  { %136 = vmatprep.subr.mxu0 %v75_v14  ;;  %v110_v44 = vld [vmem:[#allocation5 + $0x1a0] sm:$0xff]  ;;  %v109_v45 = vld [vmem:[#allocation5 + $0x198] sm:$0xff]  ;;  %v108_v46 = vld [vmem:[#allocation5 + $0x190] sm:$0xff] }
  0x36   :  { %137 = vmatpush1.msra.mxu0 %v74_v15  ;;  %v107_v47 = vld [vmem:[#allocation5 + $0x188] sm:$0xff]  ;;  %v106_v48 = vld [vmem:[#allocation5 + $0x180] sm:$0xff]  ;;  %v105_v49 = vld [vmem:[#allocation5 + $0x178] sm:$0xff] }
  0x37   :  { %138 = vmatprep.subr.mxu0 %v73_v16  ;;  %v104_v50 = vld [vmem:[#allocation5 + $0x170] sm:$0xff]  ;;  %v103_v51 = vld [vmem:[#allocation5 + $0x168] sm:$0xff]  ;;  %v102_v52 = vld [vmem:[#allocation5 + $0x160] sm:$0xff] }
  0x38   :  { %139 = vmatpush1.msra.mxu0 %v72_v17  ;;  %v101_v53 = vld [vmem:[#allocation5 + $0x158] sm:$0xff]  ;;  %v100_v54 = vld [vmem:[#allocation5 + $0x150] sm:$0xff]  ;;  %v99_v55 = vld [vmem:[#allocation5 + $0x148] sm:$0xff] }
  0x39   :  { %140 = vmatprep.subr.mxu0 %v71_v18  ;;  %v98_v56 = vld [vmem:[#allocation5 + $0x140] sm:$0xff]  ;;  %v97_v57 = vld [vmem:[#allocation5 + $0x138] sm:$0xff]  ;;  %v96_v58 = vld [vmem:[#allocation5 + $0x130] sm:$0xff] }
  0x3a   :  { %141 = vmatpush1.msra.mxu0 %v70_v19  ;;  %v95_v59 = vld [vmem:[#allocation5 + $0x128] sm:$0xff]  ;;  %v94_v60 = vld [vmem:[#allocation5 + $0x120] sm:$0xff]  ;;  %v93_v61 = vld [vmem:[#allocation5 + $0x118] sm:$0xff] }
  0x3b   :  { %142 = vmatprep.subr.mxu0 %v69_v20  ;;  %v92_v62 = vld [vmem:[#allocation5 + $0x110] sm:$0xff]  ;;  %v91_v63 = vld [vmem:[#allocation5 + $0x108] sm:$0xff]  ;;  %v90_v0 = vld [vmem:[#allocation5 + $0x100] sm:$0xff] }
  0x3c   :  { %143 = vmatpush1.msra.mxu0 %v68_v21  ;;  %v56_v1 = vld [vmem:[#allocation2] sm:$0xff] }
  0x3d   :  { %144 = vmatprep.subr.mxu0 %v67_v22 }
  0x3e   :  { %145 = vmatpush1.msra.mxu0 %v66_v23 }
  0x3f   :  { %146 = vmatprep.subr.mxu0 %v65_v25 }
  0x40   :  { %147 = vmatpush1.msra.mxu0 %v64_v26 }
  0x41   :  { %148 = vmatprep.subr.mxu0 %v63_v27 }
  0x42   :  { %149 = vmatpush1.msra.mxu0 %v62_v28 }
  0x43   :  { %150 = vmatprep.subr.mxu0 %v61_v29 }
  0x44   :  { %151 = vmatpush1.msra.mxu0 %v60_v30 }
  0x45   :  { %152 = vmatprep.subr.mxu0 %v59_v31 }
  0x46   :  { %153 = vmatpush1.msra.mxu0 %v58_v32 }
  0x47   :  { %154 = vmatprep.subr.mxu0 %v121_v33 }
  0x48   :  { %155 = vmatpush2.msra.mxu0 %v120_v34 }
  0x49   :  { %156 = vmatprep.subr.mxu0 %v119_v35 }
  0x4a   :  { %157 = vmatpush2.msra.mxu0 %v118_v36 }
  0x4b   :  { %158 = vmatprep.subr.mxu0 %v117_v37 }
  0x4c   :  { %159 = vmatpush2.msra.mxu0 %v116_v38 }
  0x4d   :  { %160 = vmatprep.subr.mxu0 %v115_v39 }
  0x4e   :  { %161 = vmatpush2.msra.mxu0 %v114_v40 }
  0x4f   :  { %162 = vmatprep.subr.mxu0 %v113_v41 }
  0x50   :  { %163 = vmatpush2.msra.mxu0 %v112_v42 }
  0x51   :  { %164 = vmatprep.subr.mxu0 %v111_v43 }
  0x52   :  { %165 = vmatpush2.msra.mxu0 %v110_v44 }
  0x53   :  { %166 = vmatprep.subr.mxu0 %v109_v45 }
  0x54   :  { %167 = vmatpush2.msra.mxu0 %v108_v46 }
  0x55   :  { %168 = vmatprep.subr.mxu0 %v107_v47 }
  0x56   :  { %169 = vmatpush2.msra.mxu0 %v106_v48 }
  0x57   :  { %170 = vmatprep.subr.mxu0 %v105_v49 }
  0x58   :  { %171 = vmatpush2.msra.mxu0 %v104_v50 }
  0x59   :  { %172 = vmatprep.subr.mxu0 %v103_v51 }
  0x5a   :  { %173 = vmatpush2.msra.mxu0 %v102_v52 }
  0x5b   :  { %174 = vmatprep.subr.mxu0 %v101_v53 }
  0x5c   :  { %175 = vmatpush2.msra.mxu0 %v100_v54 }
  0x5d   :  { %176 = vmatprep.subr.mxu0 %v99_v55 }
  0x5e   :  { %177 = vmatpush2.msra.mxu0 %v98_v56 }
  0x5f   :  { %178 = vmatprep.subr.mxu0 %v97_v57 }
  0x60   :  { %179 = vmatpush2.msra.mxu0 %v96_v58 }
  0x61   :  { %180 = vmatprep.subr.mxu0 %v95_v59 }
  0x62   :  { %181 = vmatpush2.msra.mxu0 %v94_v60 }
  0x63   :  { %182 = vmatprep.subr.mxu0 %v93_v61 }
  0x64   :  { %183 = vmatpush2.msra.mxu0 %v92_v62 }
  0x65   :  { %184 = vmatprep.subr.mxu0 %v91_v63 }
  0x66   :  { %185 = vmatpush2.msra.mxu0 %v90_v0 }
  0x67   :  { %187 = vmatmul.mubr.f32.vlgmr.msra.gmra.mxu0 %v56_v1 }
 0x127   :  { %v188_v2 = vpop.f32.mrf.mxu0 }
 0x128   :  { %200 = vst [vmem:[#allocation9] sm:$0xff] %v188_v2 }
 0x129   :  { %v190_v3 = vpop.f32.mrf.mxu0 }
 0x12a   :  { %327 = shalt.err (!%p324_p5)
}
 0x12b   :  { %222 = dma.vmem_to_hbm [thread:$0]  %s220_s2, 128, %s444_s4, [#allocation10]   ;;  %v193_v4 = vmul.f32 0.5, %v190_v3  ;;  %v197_v7 = vld [vmem:[#allocation7] sm:$0xff] }
 0x12c   :  { %s390_s12 = smov [#allocation11]   ;;  %s391_s14 = smov [#allocation8]  }
 0x12d   :  { %v194_v5 = vmul.f32 1.442695, %v193_v4  ;;  %s229_s13 = sshll.u32 %s390_s12, 4  ;;  %s209_s15 = sshll.u32 %s391_s14, 4  ;;  %s230_s13 = int_to_ptr.vmem [resolvable:$true] %s229_s13  ;;  %s210_s15 = int_to_ptr.vmem [resolvable:$true] %s209_s15 }
 0x12e   :  { %s336_s16 = scalar_lea.vmem %s230_s13, 128  ;;  %p341_p7 = scmp.lt.s32.totalorder %s230_s13, %s230_s13 }
 0x12f   :  { %254 = vpow2.f32 %v194_v5  ;;  %p337_p6 = scmp.ne.s32.totalorder %s230_s13, %s336_s16  ;;  %p342_p8 = scmp.lt.s32.totalorder %s336_s16, %s336_s16 }
 0x131   :  { %p343_p9 = por %p342_p8, %p341_p7 }
 0x133   :  { %p344_p10 = pnand %p343_p9, %p337_p6 }
 0x13c   :  { %v255_v6 = vpop.eup %254 }
 0x13d   :  { %v196_v8 = vmax.f32 %v255_v6, 0.0001 }
 0x13f   :  { %201 = vst [vmem:[#allocation11] sm:$0xff] %v196_v8  ;;  %v198_v9 = vmul.f32 %v197_v7, %v196_v8 }
 0x140   :  { %347 = shalt.err (!%p344_p10)
}
 0x141   :  { %232 = dma.vmem_to_hbm [thread:$0]  %s230_s13, 128, %s445_s5, [#allocation10]   ;;  %v199_v10 = vadd.f32 %v198_v9, %v188_v2 }
 0x142   :  { %s356_s18 = scalar_lea.vmem %s210_s15, 128  ;;  %p361_p12 = scmp.lt.s32.totalorder %s210_s15, %s210_s15 }
 0x143   :  { %202 = vst [vmem:[#allocation8] sm:$0xff] %v199_v10  ;;  %p357_p11 = scmp.ne.s32.totalorder %s210_s15, %s356_s18  ;;  %p362_p13 = scmp.lt.s32.totalorder %s356_s18, %s356_s18 }
 0x145   :  { %p363_p0 = por %p362_p13, %p361_p12 }
 0x147   :  { %p364_p1 = pnand %p363_p0, %p357_p11 }
 0x149   :  { %367 = shalt.err (!%p364_p1)
}
 0x14a   :  { %212 = dma.vmem_to_hbm [thread:$0]  %s210_s15, 128, %s443_s3, [#allocation4]  }
 0x14b   :  { %380 = dma.done.wait [#allocation4], 128  }
 0x14c   :  { %381 = vsyncadd [#allocation4], 4294967168 }
 0x14d   :  { %382 = dma.done.wait [#allocation10], 256  }
 0x14e   :  { %383 = vsyncadd [#allocation10], 4294967040 }
 0x14f   :  { %242 = vsyncpa [#allocation3], 1 }
 0x150   :  { %243 = vsyncpa [#allocation6], 1 }
 0x151   :  { %244 = vsyncpa [#allocation4], 1 }
 0x152   :  { %245 = vsyncpa [#allocation10], 1 }

</bundles_post_ra>
